<compile_context>
chip_gen: v7x
topology: tpu7x:2x2x1
jax: 0.10.0
libtpu: 0.0.40
codegen_flags: <defaults>
</compile_context>

<pallas_src>
import jax
import jax.numpy as jnp
from jax.experimental import pallas as pl
from jax.experimental.pallas import tpu as pltpu

# Model hyper-parameters (PyTorch defaults)
N_INPUT = 7
N_OUTPUT = 6
N_H = 2          # => exactly one hidden Linear(size_h, size_h) in fc_list
SIZE_H = 128

N_IN_PAD = 8     # pad the 7-wide input to 8 (sublane-friendly K), NOT 128
TB_MAX = 512     # rows per grid step (sweet spot per measured tile sweeps)


def _mlp_kernel(x_ref, w_in_ref, b_in_ref, w_h_ref, b_h_ref,
                w_out_ref, b_out_ref, o_ref):
    # fc_in (K=8 contraction) + tanh
    h = jnp.dot(x_ref[...], w_in_ref[...],
                preferred_element_type=jnp.float32) + b_in_ref[...]
    h = jnp.tanh(h)
    # single hidden Linear(128, 128) + tanh   (n_h - 1 == 1)
    h = jnp.dot(h, w_h_ref[...],
                preferred_element_type=jnp.float32) + b_h_ref[...]
    h = jnp.tanh(h)
    # fc_out (N=6, no activation)
    o_ref[...] = (jnp.dot(h, w_out_ref[...],
                          preferred_element_type=jnp.float32)
                  + b_out_ref[...]).astype(o_ref.dtype)


def init_params(key):
    """Matches the PyTorch module: weights ~ N(0, 0.02); biases keep
    nn.Linear's default U(-1/sqrt(fan_in), 1/sqrt(fan_in))."""
    ks = jax.random.split(key, 6)
    w_in = 0.02 * jax.random.normal(ks[0], (N_INPUT, SIZE_H), jnp.float32)
    b_in = jax.random.uniform(ks[1], (SIZE_H,), jnp.float32,
                              -1.0 / jnp.sqrt(N_INPUT), 1.0 / jnp.sqrt(N_INPUT))
    w_h = 0.02 * jax.random.normal(ks[2], (SIZE_H, SIZE_H), jnp.float32)
    b_h = jax.random.uniform(ks[3], (SIZE_H,), jnp.float32,
                             -1.0 / jnp.sqrt(SIZE_H), 1.0 / jnp.sqrt(SIZE_H))
    w_out = 0.02 * jax.random.normal(ks[4], (SIZE_H, N_OUTPUT), jnp.float32)
    b_out = jax.random.uniform(ks[5], (N_OUTPUT,), jnp.float32,
                               -1.0 / jnp.sqrt(SIZE_H), 1.0 / jnp.sqrt(SIZE_H))
    return w_in, b_in, w_h, b_h, w_out, b_out


@jax.jit
def mlp_forward(x, w_in, b_in, w_h, b_h, w_out, b_out):
    # --- glue: flatten + minimal padding (plain JAX, shapes static under jit) ---
    x2 = x.reshape(-1, N_INPUT).astype(jnp.float32)
    B = x2.shape[0]

    # Batch tile: large enough to amortize per-step overhead, capped by the
    # (8-row padded) batch itself.  Large batches get grid >= 2 (v7x megacore).
    B_pad8 = -(-B // 8) * 8
    TB = min(TB_MAX, B_pad8)
    B_pad = -(-B // TB) * TB

    # Only pad batch -> multiple of TB and features 7 -> 8; no 128-lane padding.
    x_p = jnp.pad(x2, ((0, B_pad - B), (0, N_IN_PAD - N_INPUT)))
    w_in_p = jnp.pad(w_in, ((0, N_IN_PAD - N_INPUT), (0, 0)))      # (8, 128)
    b_in_p = b_in.reshape(1, SIZE_H)
    b_h_p = b_h.reshape(1, SIZE_H)
    b_out_p = b_out.reshape(1, N_OUTPUT)

    full = lambda i: (0, 0)   # grid-invariant weight/bias blocks

    # TODO(synk): for v6e/v7x a further win is bf16 matmul operands
    # (f32 accumulate); kept f32 here to preserve the PyTorch f32 forward.
    out_p = pl.pallas_call(
        _mlp_kernel,
        out_shape=jax.ShapeDtypeStruct((B_pad, N_OUTPUT), jnp.float32),
        grid_spec=pltpu.PrefetchScalarGridSpec(
            num_scalar_prefetch=0,
            grid=(B_pad // TB,),
            in_specs=[
                pl.BlockSpec((TB, N_IN_PAD), lambda i: (i, 0)),     # x tile
                pl.BlockSpec((N_IN_PAD, SIZE_H), full),             # W_in (8,128)
                pl.BlockSpec((1, SIZE_H), full),                    # b_in
                pl.BlockSpec((SIZE_H, SIZE_H), full),               # W_h
                pl.BlockSpec((1, SIZE_H), full),                    # b_h
                pl.BlockSpec((SIZE_H, N_OUTPUT), full),             # W_out (128,6)
                pl.BlockSpec((1, N_OUTPUT), full),                  # b_out
            ],
            out_specs=pl.BlockSpec((TB, N_OUTPUT), lambda i: (i, 0)),
        ),
        compiler_params=pltpu.CompilerParams(
            dimension_semantics=("parallel",)),
    )(x_p, w_in_p, b_in_p, w_h, b_h_p, w_out, b_out_p)

    # strip batch padding
    return out_p[:B, :]


def mlp_reference(x, w_in, b_in, w_h, b_h, w_out, b_out):
    h = jnp.tanh(x.reshape(-1, N_INPUT).astype(jnp.float32) @ w_in + b_in)
    h = jnp.tanh(h @ w_h + b_h)
    return h @ w_out + b_out


if __name__ == "__main__":
    key = jax.random.PRNGKey(0)
    k_x1, k_x2, k_p = jax.random.split(key, 3)
    params = init_params(k_p)

    # small input consistent with the module: view(-1, 7) -> 8 rows
    x_small = jax.random.normal(k_x1, (2, 4, N_INPUT), jnp.float32)
    out_small = mlp_forward(x_small, *params)
    jax.block_until_ready(out_small)
    ref_small = mlp_reference(x_small, *params)
    assert out_small.shape == (8, N_OUTPUT), out_small.shape
    err_s = float(jnp.max(jnp.abs(out_small - ref_small)))
    assert jnp.allclose(out_small, ref_small, atol=1e-4, rtol=1e-4), err_s

    # second check: exercises the 512-row tiles, multi-step grid and padded tail
    x_big = jax.random.normal(k_x2, (1173, N_INPUT), jnp.float32)
    out_big = mlp_forward(x_big, *params)
    jax.block_until_ready(out_big)
    ref_big = mlp_reference(x_big, *params)
    assert out_big.shape == (1173, N_OUTPUT), out_big.shape
    err_b = float(jnp.max(jnp.abs(out_big - ref_big)))
    assert jnp.allclose(out_big, ref_big, atol=1e-4, rtol=1e-4), err_b

    print("KERNEL_OK")
</pallas_src>

<mosaic_0001>
module attributes {stable_mosaic.version = 11 : i64} {
  func.func @_mlp_kernel(%arg0: i32, %arg1: memref<8x8xf32, #tpu.memory_space<vmem>>, %arg2: memref<8x128xf32, #tpu.memory_space<vmem>>, %arg3: memref<1x128xf32, #tpu.memory_space<vmem>>, %arg4: memref<128x128xf32, #tpu.memory_space<vmem>>, %arg5: memref<1x128xf32, #tpu.memory_space<vmem>>, %arg6: memref<128x6xf32, #tpu.memory_space<vmem>>, %arg7: memref<1x6xf32, #tpu.memory_space<vmem>>, %arg8: memref<8x6xf32, #tpu.memory_space<vmem>>) attributes {dimension_semantics = [#tpu.dimension_semantics<parallel>], iteration_bounds = array<i64: 1>, scalar_prefetch = 0 : i64, scratch_operands = 0 : i64, tpu.core_type = #tpu.core_type<tc>, window_params = [{transform_indices = @transform_0, window_bounds = array<i64: 8, 8>}, {pipeline_mode = #tpu.pipeline_mode<synchronous>, transform_indices = @transform_1, window_bounds = array<i64: 8, 128>}, {pipeline_mode = #tpu.pipeline_mode<synchronous>, transform_indices = @transform_2, window_bounds = array<i64: 1, 128>}, {pipeline_mode = #tpu.pipeline_mode<synchronous>, transform_indices = @transform_3, window_bounds = array<i64: 128, 128>}, {pipeline_mode = #tpu.pipeline_mode<synchronous>, transform_indices = @transform_4, window_bounds = array<i64: 1, 128>}, {pipeline_mode = #tpu.pipeline_mode<synchronous>, transform_indices = @transform_5, window_bounds = array<i64: 128, 6>}, {pipeline_mode = #tpu.pipeline_mode<synchronous>, transform_indices = @transform_6, window_bounds = array<i64: 1, 6>}, {transform_indices = @transform_7, window_bounds = array<i64: 8, 6>}]} {
    %c0 = arith.constant 0 : index
    %c0_0 = arith.constant 0 : index
    %0 = vector.load %arg1[%c0, %c0_0] : memref<8x8xf32, #tpu.memory_space<vmem>>, vector<8x8xf32>
    %c0_1 = arith.constant 0 : index
    %c0_2 = arith.constant 0 : index
    %1 = vector.load %arg2[%c0_1, %c0_2] : memref<8x128xf32, #tpu.memory_space<vmem>>, vector<8x128xf32>
    %cst = arith.constant dense<0.000000e+00> : vector<8x128xf32>
    %2 = tpu.matmul %0, %1, %cst {dimension_numbers = #tpu.dot_dimension_numbers<[1], [0], [0], [1], [0, 0, 1, 1], [], []>} : vector<8x8xf32>, vector<8x128xf32>, vector<8x128xf32> -> vector<8x128xf32>
    %c0_3 = arith.constant 0 : index
    %c0_4 = arith.constant 0 : index
    %3 = vector.load %arg3[%c0_3, %c0_4] : memref<1x128xf32, #tpu.memory_space<vmem>>, vector<1x128xf32>
    %4 = vector.broadcast %3 : vector<1x128xf32> to vector<8x128xf32>
    %5 = arith.addf %2, %4 : vector<8x128xf32>
    %6 = math.tanh %5 : vector<8x128xf32>
    %c0_5 = arith.constant 0 : index
    %c0_6 = arith.constant 0 : index
    %7 = vector.load %arg4[%c0_5, %c0_6] : memref<128x128xf32, #tpu.memory_space<vmem>>, vector<128x128xf32>
    %cst_7 = arith.constant dense<0.000000e+00> : vector<8x128xf32>
    %8 = tpu.matmul %6, %7, %cst_7 {dimension_numbers = #tpu.dot_dimension_numbers<[1], [0], [0], [1], [0, 0, 1, 1], [], []>} : vector<8x128xf32>, vector<128x128xf32>, vector<8x128xf32> -> vector<8x128xf32>
    %c0_8 = arith.constant 0 : index
    %c0_9 = arith.constant 0 : index
    %9 = vector.load %arg5[%c0_8, %c0_9] : memref<1x128xf32, #tpu.memory_space<vmem>>, vector<1x128xf32>
    %10 = vector.broadcast %9 : vector<1x128xf32> to vector<8x128xf32>
    %11 = arith.addf %8, %10 : vector<8x128xf32>
    %12 = math.tanh %11 : vector<8x128xf32>
    %c0_10 = arith.constant 0 : index
    %c0_11 = arith.constant 0 : index
    %13 = vector.load %arg6[%c0_10, %c0_11] : memref<128x6xf32, #tpu.memory_space<vmem>>, vector<128x6xf32>
    %cst_12 = arith.constant dense<0.000000e+00> : vector<8x6xf32>
    %14 = tpu.matmul %12, %13, %cst_12 {dimension_numbers = #tpu.dot_dimension_numbers<[1], [0], [0], [1], [0, 0, 1, 1], [], []>} : vector<8x128xf32>, vector<128x6xf32>, vector<8x6xf32> -> vector<8x6xf32>
    %c0_13 = arith.constant 0 : index
    %c0_14 = arith.constant 0 : index
    %15 = vector.load %arg7[%c0_13, %c0_14] : memref<1x6xf32, #tpu.memory_space<vmem>>, vector<1x6xf32>
    %16 = vector.broadcast %15 : vector<1x6xf32> to vector<8x6xf32>
    %17 = arith.addf %14, %16 : vector<8x6xf32>
    %c0_15 = arith.constant 0 : index
    %c0_16 = arith.constant 0 : index
    %18 = vector.load %arg8[%c0_15, %c0_16] : memref<8x6xf32, #tpu.memory_space<vmem>>, vector<8x6xf32>
    tpu.vector_store %arg8[%c0_15, %c0_16], %17 {strides = array<i32>} : memref<8x6xf32, #tpu.memory_space<vmem>>, vector<8x6xf32>,
    return
  }
  func.func @transform_0(%arg0: i32) -> (i32, i32) {
    %c0_i32 = arith.constant 0 : i32
    %c0_i32_0 = arith.constant 0 : i32
    return %arg0, %c0_i32 : i32, i32
  }
  func.func @transform_1(%arg0: i32) -> (i32, i32) {
    %c0_i32 = arith.constant 0 : i32
    %c0_i32_0 = arith.constant 0 : i32
    %c0_i32_1 = arith.constant 0 : i32
    return %c0_i32, %c0_i32_0 : i32, i32
  }
  func.func @transform_2(%arg0: i32) -> (i32, i32) {
    %c0_i32 = arith.constant 0 : i32
    %c0_i32_0 = arith.constant 0 : i32
    %c0_i32_1 = arith.constant 0 : i32
    return %c0_i32, %c0_i32_0 : i32, i32
  }
  func.func @transform_3(%arg0: i32) -> (i32, i32) {
    %c0_i32 = arith.constant 0 : i32
    %c0_i32_0 = arith.constant 0 : i32
    %c0_i32_1 = arith.constant 0 : i32
    return %c0_i32, %c0_i32_0 : i32, i32
  }
  func.func @transform_4(%arg0: i32) -> (i32, i32) {
    %c0_i32 = arith.constant 0 : i32
    %c0_i32_0 = arith.constant 0 : i32
    %c0_i32_1 = arith.constant 0 : i32
    return %c0_i32, %c0_i32_0 : i32, i32
  }
  func.func @transform_5(%arg0: i32) -> (i32, i32) {
    %c0_i32 = arith.constant 0 : i32
    %c0_i32_0 = arith.constant 0 : i32
    %c0_i32_1 = arith.constant 0 : i32
    return %c0_i32, %c0_i32_0 : i32, i32
  }
  func.func @transform_6(%arg0: i32) -> (i32, i32) {
    %c0_i32 = arith.constant 0 : i32
    %c0_i32_0 = arith.constant 0 : i32
    %c0_i32_1 = arith.constant 0 : i32
    return %c0_i32, %c0_i32_0 : i32, i32
  }
  func.func @transform_7(%arg0: i32) -> (i32, i32) {
    %c0_i32 = arith.constant 0 : i32
    %c0_i32_0 = arith.constant 0 : i32
    return %arg0, %c0_i32 : i32, i32
  }
}

</mosaic_0001>

<bundles_post_ra>
// kernel: mlp_forward.1
= control target key start
LH: loop header
LB: loop body
LE: loop exit
PB: predicated region body
PF: predicated region fallthrough
CT: control target
= control target key end

     0   :  { %vm36_vm0 = vcmask 64512   ;;  %v509_v2 = vmov 0.0   ;;  %vm510_vm1 = vmmov 0   ;;  %v511_v6 = vmov 0.0|0.0   ;;  %s695_s0 = inlined_call_operand.vmem [shape: f32[8,8], index: 0, kind: input, shape index: {}]   ;;  %s696_s1 = inlined_call_operand.vmem [shape: f32[8,128], index: 1, kind: input, shape index: {}]   ;;  %s697_s2 = inlined_call_operand.vmem [shape: f32[1,128], index: 2, kind: input, shape index: {}]   ;;  %s698_s3 = inlined_call_operand.vmem [shape: f32[128,128], index: 3, kind: input, shape index: {}]   ;;  %s699_s4 = inlined_call_operand.vmem [shape: f32[1,128], index: 4, kind: input, shape index: {}]   ;;  %s700_s5 = inlined_call_operand.vmem [shape: f32[128,6], index: 5, kind: input, shape index: {}]   ;;  %s701_s6 = inlined_call_operand.vmem [shape: f32[1,6], index: 6, kind: input, shape index: {}]   ;;  %s702_s7 = inlined_call_operand.hbm [shape: f32[8,6], index: 7, kind: output, shape index: {}]  }
   0x1   :  { %v28_v0 = vld [vmem:[%s696_s1] sm:$0xff]  ;;  %354 = vmatprep.subr.mxu0 %v509_v2  ;;  %356 = vmatprep.mubr.msk.f32.mxu0 %vm510_vm1, %v509_v2  ;;  %v112_v4 = vld [vmem:[%s698_s3 + $0x8] sm:$0xff]  ;;  %v113_v5 = vld [vmem:[%s698_s3 + $0x10] sm:$0xff] }
   0x2   :  { %v27_v1 = vld [vmem:[%s695_s0] sm:$0xff]  ;;  %355 = vmatpush3.msra.mxu0 %v28_v0  ;;  %429 = vmatprep.subr.bf16.mxu1 %v511_v6  ;;  %v114_v8 = vld [vmem:[%s698_s3 + $0x18] sm:$0xff] }
   0x3   :  { %v111_v3 = vld [vmem:[%s698_s3] sm:$0xff]  ;;  %357 = vmatmul.mubr.msk.f32.vlgmr.msra.gmra.mrb[0].mxu0 %vm36_vm0, %v27_v1  ;;  %391 = vmatprep.mubr.msk.f32.mxu1 %vm510_vm1, %v509_v2  ;;  %v433_v9 = vpack.c.bf16 %v114_v8, %v113_v5 }
   0x4   :  { %v430_v7 = vpack.c.bf16 %v112_v4, %v111_v3  ;;  %453 = vmatprep.subr.bf16.mxu0 %v511_v6 }
   0x6   :  { %431 = vmatpush3.bf16.msra.mxu1 %v430_v7 }
   0x7   :  { %12 = vsyncpa [#allocation3], 0  ;;  %432 = vmatprep.subr.bf16.mxu1 %v511_v6  ;;  %v115_v10 = vld [vmem:[%s698_s3 + $0x20] sm:$0xff]  ;;  %v116_v11 = vld [vmem:[%s698_s3 + $0x28] sm:$0xff]  ;;  %426 = vmatprep.mubr.msk.f32.mxu0 %vm510_vm1, %v509_v2  ;;  %vm298_vm2 = vcmask 48128  }
   0x8   :  { %v436_v12 = vpack.c.bf16 %v116_v11, %v115_v10  ;;  %v117_v13 = vld [vmem:[%s698_s3 + $0x30] sm:$0xff]  ;;  %v118_v14 = vld [vmem:[%s698_s3 + $0x38] sm:$0xff]  ;;  %v119_v16 = vld [vmem:[%s698_s3 + $0x40] sm:$0xff] }
   0x9   :  { %v439_v15 = vpack.c.bf16 %v118_v14, %v117_v13  ;;  %v120_v17 = vld [vmem:[%s698_s3 + $0x48] sm:$0xff]  ;;  %v121_v19 = vld [vmem:[%s698_s3 + $0x50] sm:$0xff]  ;;  %v122_v20 = vld [vmem:[%s698_s3 + $0x58] sm:$0xff] }
   0xa   :  { %434 = vmatpush3.bf16.msra.mxu1 %v433_v9  ;;  %v442_v18 = vpack.c.bf16 %v120_v17, %v119_v16  ;;  %v445_v21 = vpack.c.bf16 %v122_v20, %v121_v19  ;;  %v123_v22 = vld [vmem:[%s698_s3 + $0x60] sm:$0xff]  ;;  %v124_v23 = vld [vmem:[%s698_s3 + $0x68] sm:$0xff]  ;;  %v125_v25 = vld [vmem:[%s698_s3 + $0x70] sm:$0xff] }
   0xb   :  { %435 = vmatprep.subr.bf16.mxu1 %v511_v6  ;;  %v448_v24 = vpack.c.bf16 %v124_v23, %v123_v22  ;;  %v126_v26 = vld [vmem:[%s698_s3 + $0x78] sm:$0xff]  ;;  %v205_v28 = vld [vmem:[%s700_s5] sm:$0xff]  ;;  %v206_v29 = vld [vmem:[%s700_s5 + $0x8] sm:$0xff] }
   0xc   :  { %v451_v27 = vpack.c.bf16 %v126_v26, %v125_v25  ;;  %v207_v30 = vld [vmem:[%s700_s5 + $0x10] sm:$0xff]  ;;  %v454_v31 = vpack.c.bf16 %v206_v29, %v205_v28  ;;  %v208_v32 = vld [vmem:[%s700_s5 + $0x18] sm:$0xff]  ;;  %v209_v34 = vld [vmem:[%s700_s5 + $0x20] sm:$0xff] }
   0xd   :  { %v457_v33 = vpack.c.bf16 %v208_v32, %v207_v30  ;;  %v210_v35 = vld [vmem:[%s700_s5 + $0x28] sm:$0xff]  ;;  %v211_v37 = vld [vmem:[%s700_s5 + $0x30] sm:$0xff]  ;;  %v212_v38 = vld [vmem:[%s700_s5 + $0x38] sm:$0xff] }
   0xe   :  { %437 = vmatpush3.bf16.msra.mxu1 %v436_v12  ;;  %455 = vmatpush3.bf16.msra.mxu0 %v454_v31  ;;  %v460_v36 = vpack.c.bf16 %v210_v35, %v209_v34  ;;  %v463_v39 = vpack.c.bf16 %v212_v38, %v211_v37  ;;  %v213_v40 = vld [vmem:[%s700_s5 + $0x40] sm:$0xff]  ;;  %v214_v41 = vld [vmem:[%s700_s5 + $0x48] sm:$0xff]  ;;  %v215_v48 = vld [vmem:[%s700_s5 + $0x50] sm:$0xff] }
   0xf   :  { %438 = vmatprep.subr.bf16.mxu1 %v511_v6  ;;  %456 = vmatprep.subr.bf16.mxu0 %v511_v6  ;;  %v466_v42 = vpack.c.bf16 %v214_v41, %v213_v40  ;;  %v314_v43 = vld [vmem:[%s697_s2] ss:$0 sm:$0xff]  ;;  %v216_v49 = vld [vmem:[%s700_s5 + $0x58] sm:$0xff]  ;;  %v218_v52 = vld [vmem:[%s700_s5 + $0x68] sm:$0xff] }
  0x10   :  { %v469_v50 = vpack.c.bf16 %v216_v49, %v215_v48  ;;  %v217_v51 = vld [vmem:[%s700_s5 + $0x60] sm:$0xff]  ;;  %v219_v54 = vld [vmem:[%s700_s5 + $0x70] sm:$0xff]  ;;  %v220_v55 = vld [vmem:[%s700_s5 + $0x78] sm:$0xff]  ;;  %s512_s5 = smov [#allocation2]  }
  0x11   :  { %v472_v53 = vpack.c.bf16 %v218_v52, %v217_v51  ;;  %v475_v56 = vpack.c.bf16 %v220_v55, %v219_v54  ;;  %v316_v57 = vld [vmem:[%s699_s4] ss:$0 sm:$0xff]  ;;  %s306_s20 = sshll.u32 %s512_s5, 4  ;;  %s307_s20 = int_to_ptr.vmem [resolvable:$true] %s306_s20 }
  0x12   :  { %440 = vmatpush3.bf16.msra.mxu1 %v439_v15  ;;  %458 = vmatpush3.bf16.msra.mxu0 %v457_v33  ;;  %v317_v62 = vld [vmem:[%s701_s6] ss:$0 sm:$0xff]  ;;  %s485_s21 = scalar_lea.vmem %s307_s20, 128  ;;  %p490_p1 = scmp.lt.s32.totalorder %s307_s20, %s307_s20 }
  0x13   :  { %441 = vmatprep.subr.bf16.mxu1 %v511_v6  ;;  %459 = vmatprep.subr.bf16.mxu0 %v511_v6  ;;  %p486_p0 = scmp.ne.s32.totalorder %s307_s20, %s485_s21  ;;  %p491_p2 = scmp.lt.s32.totalorder %s485_s21, %s485_s21 }
  0x15   :  { %p492_p3 = por %p491_p2, %p490_p1 }
  0x16   :  { %443 = vmatpush3.bf16.msra.mxu1 %v442_v18  ;;  %461 = vmatpush3.bf16.msra.mxu0 %v460_v36 }
  0x17   :  { %444 = vmatprep.subr.bf16.mxu1 %v511_v6  ;;  %462 = vmatprep.subr.bf16.mxu0 %v511_v6  ;;  %p493_p4 = pnand %p492_p3, %p486_p0 }
  0x1a   :  { %446 = vmatpush3.bf16.msra.mxu1 %v445_v21  ;;  %464 = vmatpush3.bf16.msra.mxu0 %v463_v39 }
  0x1b   :  { %447 = vmatprep.subr.bf16.mxu1 %v511_v6  ;;  %465 = vmatprep.subr.bf16.mxu0 %v511_v6 }
  0x1e   :  { %449 = vmatpush3.bf16.msra.mxu1 %v448_v24  ;;  %467 = vmatpush3.bf16.msra.mxu0 %v466_v42 }
  0x1f   :  { %450 = vmatprep.subr.bf16.mxu1 %v511_v6  ;;  %468 = vmatprep.subr.bf16.mxu0 %v511_v6 }
  0x22   :  { %452 = vmatpush3.bf16.msra.mxu1 %v451_v27  ;;  %470 = vmatpush3.bf16.msra.mxu0 %v469_v50 }
  0x23   :  { %471 = vmatprep.subr.bf16.mxu0 %v511_v6 }
  0x26   :  { %473 = vmatpush3.bf16.msra.mxu0 %v472_v53 }
  0x27   :  { %474 = vmatprep.subr.bf16.mxu0 %v511_v6 }
  0x2a   :  { %476 = vmatpush3.bf16.msra.mxu0 %v475_v56 }
  0xd6   :  { %v106_v44 = vpop.f32.mrb[0].mxu0 }
  0xd7   :  { %v107_v45 = vadd.f32 %v314_v43, %v106_v44  ;;  %v358_v46 = vpop.f32.mrb[1].mxu0 }
  0xd9   :  { %481 = vtanh.f32 %v107_v45 }
  0xe3   :  { %v482_v47 = vpop.eup %481 }
  0xe4   :  { %392 = vmatmul.mubr.f32.vlgmr.msra.gmra.mrb[0].mxu1 %v482_v47 }
 0x1b7   :  { %v200_v58 = vpop.f32.mrb[0].mxu1 }
 0x1b8   :  { %v201_v59 = vadd.f32 %v316_v57, %v200_v58  ;;  %v393_v60 = vpop.f32.mrb[1].mxu1 }
 0x1ba   :  { %483 = vtanh.f32 %v201_v59 }
 0x1c4   :  { %v484_v61 = vpop.eup %483 }
 0x1c5   :  { %427 = vmatmul.mubr.f32.vlgmr.msra.gmra.mrb[2].mxu0 %v484_v61 }
 0x298   :  { %v294_v63 = vpop.f32.mrb[2].mxu0 }
 0x299   :  { %v295_v0 = vadd.f32 %v317_v62, %v294_v63  ;;  %v428_v1 = vpop.f32.mrb[3].mxu0 }
 0x29b   :  { %299 = vst.msk [vmem:[#allocation2] sm:$0xff] %vm298_vm2, %v295_v0 }
 0x29c   :  { %496 = shalt.err (!%p493_p4)
}
 0x29d   :  { %s497_s23 = scalar_lea.hbm %s702_s7, 128 }
 0x29e   :  { %p498_p5 = scmp.ne.s32.totalorder %s702_s7, %s497_s23  ;;  %p501_p6 = scmp.lt.u32.totalorder %s497_s23, %s702_s7 }
 0x2a0   :  { %p503_p7 = pnand %p501_p6, %p498_p5 }
 0x2a2   :  { %506 = shalt.err (!%p503_p7)
}
 0x2a3   :  { %309 = dma.vmem_to_hbm [thread:$0]  %s307_s20, 128, %s702_s7, [#allocation3]  }
 0x2a4   :  { %507 = dma.done.wait [#allocation3], 128  }
 0x2a5   :  { %508 = vsyncadd [#allocation3], 4294967168 }
 0x2a6   :  { %313 = vsyncpa [#allocation3], 1 }

</bundles_post_ra>
